<compile_context>
chip_gen: v6e
topology: v6e:2x2x1
jax: 0.10.0
libtpu: 0.0.40
codegen_flags: <defaults>
</compile_context>

<pallas_src>
import jax
import jax.numpy as jnp
from jax.experimental import pallas as pl
from jax.experimental.pallas import tpu as pltpu


# ---------------------------------------------------------------------------
# Pass 1: cast x -> bf16 and accumulate GAP sums in the same HBM read of x.
# ---------------------------------------------------------------------------
def prologue_kernel(x_ref, xbf_ref, sum_ref):
    x = x_ref[0].astype(jnp.float32)                  # (C, T)
    xbf_ref[0] = x.astype(jnp.bfloat16)

    @pl.when(pl.program_id(1) == 0)
    def _():
        sum_ref[...] = jnp.zeros_like(sum_ref)

    # f32 accumulation of the spatial sum (padded columns are zero, so harmless).
    sum_ref[0] += jnp.sum(x, axis=1, keepdims=True)   # (C, 1)


# ---------------------------------------------------------------------------
# Pass 2: local branch (two BN-folded 1x1 convs + ReLU) + per-batch bias that
# already contains the global branch, then sigmoid.
# ---------------------------------------------------------------------------
def msca_kernel(x_ref, wl1t_ref, bl1_ref, wl2t_ref, bias2_ref, out_ref):
    x = x_ref[0]                                                       # (C, T) bf16
    h = jnp.dot(wl1t_ref[...], x, preferred_element_type=jnp.float32)  # (Cmid, T)
    h = jnp.maximum(h + bl1_ref[...], 0.0).astype(jnp.bfloat16)
    z = jnp.dot(wl2t_ref[...], h, preferred_element_type=jnp.float32)  # (C, T)
    z = z + bias2_ref[0]                               # bias2 = bl2 + xg (global branch)
    # sigmoid(z) = 0.5 * (tanh(z/2) + 1): tanh goes to the EUP slot, no VALU divide.
    out_ref[0] = (0.5 * (jnp.tanh(0.5 * z) + 1.0)).astype(out_ref.dtype)


# ---------------------------------------------------------------------------
# Helpers
# ---------------------------------------------------------------------------
def fold_bn(w, b, gamma, beta, mean, var, eps=1e-5):
    # Fold eval-mode BatchNorm into the preceding 1x1 conv.  w: (Cin, Cout), b: (Cout,)
    scale = gamma / jnp.sqrt(var + eps)
    return w * scale[None, :], (b - mean) * scale + beta


def make_params(key, C, r):
    Cmid = C // r
    ks = jax.random.split(key, 12)

    def conv_w(k, cin, cout):
        return jax.random.normal(k, (cin, cout), jnp.float32) * 0.1

    def bn(k, c):
        k1, k2, k3, k4 = jax.random.split(k, 4)
        gamma = 1.0 + 0.1 * jax.random.normal(k1, (c,), jnp.float32)
        beta = 0.1 * jax.random.normal(k2, (c,), jnp.float32)
        mean = 0.1 * jax.random.normal(k3, (c,), jnp.float32)
        var = jnp.abs(jax.random.normal(k4, (c,), jnp.float32)) + 0.5
        return gamma, beta, mean, var

    # local branch
    wl1, bl1 = fold_bn(conv_w(ks[0], C, Cmid),
                       0.1 * jax.random.normal(ks[1], (Cmid,), jnp.float32),
                       *bn(ks[2], Cmid))
    wl2, bl2 = fold_bn(conv_w(ks[3], Cmid, C),
                       0.1 * jax.random.normal(ks[4], (C,), jnp.float32),
                       *bn(ks[5], C))
    # global branch
    wg1, bg1 = fold_bn(conv_w(ks[6], C, Cmid),
                       0.1 * jax.random.normal(ks[7], (Cmid,), jnp.float32),
                       *bn(ks[8], Cmid))
    wg2, bg2 = fold_bn(conv_w(ks[9], Cmid, C),
                       0.1 * jax.random.normal(ks[10], (C,), jnp.float32),
                       *bn(ks[11], C))
    return (wl1, bl1, wl2, bl2, wg1, bg1, wg2, bg2)


def _pick_spatial_tile(hwp, C, n_batch, *, vmem_tile_budget=12 << 20, min_steps=4):
    """Largest lane-dense tile (multiple of 128, divides hwp) such that the
    double-buffered in+out tile buffers stay within `vmem_tile_budget` (safe for
    v7x's 32 MiB scoped / 64 MiB physical VMEM and v5e's raised scoped limit),
    while keeping at least a few grid steps for pipelining / megacore."""
    per_col = 2 * C * 4 + 2 * C * 4          # conservative: f32 both directions, 2 bufs each
    cap = max(128, (vmem_tile_budget // per_col) // 128 * 128)
    cands = [t for t in range(128, hwp + 1, 128) if hwp % t == 0 and t <= cap]
    if not cands:
        cands = [128]

    def steps(t):
        return n_batch * (hwp // t)

    good = [t for t in cands if steps(t) >= min_steps]
    if good:
        return max(good)
    good2 = [t for t in cands if steps(t) >= 2]
    return max(good2) if good2 else max(cands)


# ---------------------------------------------------------------------------
# Forward
# ---------------------------------------------------------------------------
def msca_forward(x_nchw, params):
    N, C, H, W = x_nchw.shape
    HW = H * W
    wl1, bl1, wl2, bl2, wg1, bg1, wg2, bg2 = params
    Cmid = wl1.shape[1]

    # Channel-major view (contiguous reshape).  Pad the spatial axis up to a
    # multiple of 128: lane-dense tiles, no whole-image fallback block.
    HWp = ((HW + 127) // 128) * 128
    x = x_nchw.reshape(N, C, HW)
    if HWp != HW:
        x = jnp.pad(x, ((0, 0), (0, 0), (0, HWp - HW)))

    T = _pick_spatial_tile(HWp, C, N)
    n_tiles = HWp // T
    vmem_limit = 32 * 1024 * 1024  # raise v5e's 16 MiB scoped default; fits v6e/v7x

    # ---- pass 1: bf16 cast + GAP partial sums in a single read of x ----
    x_bf, sums = pl.pallas_call(
        prologue_kernel,
        out_shape=(jax.ShapeDtypeStruct((N, C, HWp), jnp.bfloat16),
                   jax.ShapeDtypeStruct((N, C, 1), jnp.float32)),
        grid=(N, n_tiles),
        in_specs=[pl.BlockSpec((1, C, T), lambda n, t: (n, 0, t))],
        out_specs=(pl.BlockSpec((1, C, T), lambda n, t: (n, 0, t)),
                   pl.BlockSpec((1, C, 1), lambda n, t: (n, 0, 0))),
        compiler_params=pltpu.CompilerParams(
            dimension_semantics=("parallel", "arbitrary"),
            vmem_limit_bytes=vmem_limit),
    )(x)

    # ---- global branch on the pooled vector (tiny; plain JAX) ----
    gp = sums[:, :, 0] / jnp.float32(HW)                           # (N, C)
    hg = jnp.maximum(gp @ wg1 + bg1, 0.0)                          # (N, Cmid)
    xg = hg @ wg2 + bg2                                            # (N, C)
    # Fold global-branch output + second local bias into one per-batch bias.
    bias2 = (xg + bl2)[:, :, None].astype(jnp.float32)             # (N, C, 1)

    # Pre-transposed bf16 weights for channel-major MXU matmuls (f32 accumulate).
    wl1t = wl1.T.astype(jnp.bfloat16)                              # (Cmid, C)
    wl2t = wl2.T.astype(jnp.bfloat16)                              # (C, Cmid)
    bl1c = bl1[:, None].astype(jnp.float32)                        # (Cmid, 1)

    # ---- pass 2: local branch + bias + sigmoid ----
    out = pl.pallas_call(
        msca_kernel,
        out_shape=jax.ShapeDtypeStruct((N, C, HWp), x_nchw.dtype),
        grid=(N, n_tiles),
        in_specs=[
            pl.BlockSpec((1, C, T), lambda n, t: (n, 0, t)),       # x tile (bf16)
            pl.BlockSpec((Cmid, C), lambda n, t: (0, 0)),          # wl1^T
            pl.BlockSpec((Cmid, 1), lambda n, t: (0, 0)),          # bl1
            pl.BlockSpec((C, Cmid), lambda n, t: (0, 0)),          # wl2^T
            pl.BlockSpec((1, C, 1), lambda n, t: (n, 0, 0)),       # bl2 + xg (per batch)
        ],
        out_specs=pl.BlockSpec((1, C, T), lambda n, t: (n, 0, t)),
        compiler_params=pltpu.CompilerParams(
            dimension_semantics=("parallel", "parallel"),
            vmem_limit_bytes=vmem_limit),
    )(x_bf, wl1t, bl1c, wl2t, bias2)

    if HWp != HW:
        out = out[:, :, :HW]
    return out.reshape(N, C, H, W)


def msca_reference(x_nchw, params):
    # Pure-JAX f32 reference of the same (BN-folded) forward.
    N, C, H, W = x_nchw.shape
    x = jnp.transpose(x_nchw, (0, 2, 3, 1)).reshape(N, H * W, C)
    wl1, bl1, wl2, bl2, wg1, bg1, wg2, bg2 = params
    xl = jnp.maximum(x @ wl1 + bl1, 0.0) @ wl2 + bl2
    gp = jnp.mean(x, axis=1, keepdims=True)
    xg = jnp.maximum(gp @ wg1 + bg1, 0.0) @ wg2 + bg2
    wei = jax.nn.sigmoid(xl + xg)
    return jnp.transpose(wei.reshape(N, H, W, C), (0, 3, 1, 2))


if __name__ == "__main__":
    key = jax.random.PRNGKey(0)
    kx, kp = jax.random.split(key)

    N, C, H, W = 2, 64, 16, 16   # channels=64, r=4 as in the module defaults
    r = 4
    x = jax.random.normal(kx, (N, C, H, W), jnp.float32)
    params = make_params(kp, C, r)

    wei = msca_forward(x, params)
    wei = jax.block_until_ready(wei)

    ref = msca_reference(x, params)
    assert wei.shape == (N, C, H, W)
    # bf16 MXU operands (f32 accumulation) -> allow small deviation from the f32 reference.
    assert jnp.max(jnp.abs(wei - ref)) < 1e-2

    print("KERNEL_OK")
</pallas_src>

<mosaic_0001>
module attributes {stable_mosaic.version = 11 : i64} {
  func.func @prologue_kernel(%arg0: i32, %arg1: i32, %arg2: memref<1x64x128xf32, #tpu.memory_space<vmem>>, %arg3: memref<1x64x128xbf16, #tpu.memory_space<vmem>>, %arg4: memref<1x64x1xf32, #tpu.memory_space<vmem>>) attributes {dimension_semantics = [#tpu.dimension_semantics<parallel>, #tpu.dimension_semantics<arbitrary>], iteration_bounds = array<i64: 2, 2>, scalar_prefetch = 0 : i64, scratch_operands = 0 : i64, tpu.core_type = #tpu.core_type<tc>, window_params = [{transform_indices = @transform_0, window_bounds = array<i64: 1, 64, 128>}, {transform_indices = @transform_1, window_bounds = array<i64: 1, 64, 128>}, {transform_indices = @transform_2, window_bounds = array<i64: 1, 64, 1>}]} {
    %c0 = arith.constant 0 : index
    %c0_0 = arith.constant 0 : index
    %c0_1 = arith.constant 0 : index
    %0 = vector.load %arg2[%c0, %c0_0, %c0_1] : memref<1x64x128xf32, #tpu.memory_space<vmem>>, vector<1x64x128xf32>
    %1 = vector.shape_cast %0 : vector<1x64x128xf32> to vector<64x128xf32>
    %2 = arith.truncf %1 : vector<64x128xf32> to vector<64x128xbf16>
    %c0_2 = arith.constant 0 : index
    %c0_3 = arith.constant 0 : index
    %c0_4 = arith.constant 0 : index
    %3 = vector.load %arg3[%c0_2, %c0_3, %c0_4] : memref<1x64x128xbf16, #tpu.memory_space<vmem>>, vector<1x64x128xbf16>
    %4 = vector.shape_cast %3 : vector<1x64x128xbf16> to vector<64x128xbf16>
    %5 = vector.shape_cast %2 : vector<64x128xbf16> to vector<1x64x128xbf16>
    tpu.vector_store %arg3[%c0_2, %c0_3, %c0_4], %5 {strides = array<i32>} : memref<1x64x128xbf16, #tpu.memory_space<vmem>>, vector<1x64x128xbf16>,
    %c0_i32 = arith.constant 0 : i32
    %6 = arith.cmpi eq, %arg1, %c0_i32 : i32
    %7 = arith.extui %6 : i1 to i32
    %c0_i32_5 = arith.constant 0 : i32
    %8 = arith.cmpi ne, %7, %c0_i32_5 : i32
    scf.if %8 {
      %cst_12 = arith.constant 0.000000e+00 : f32
      %17 = vector.broadcast %cst_12 : f32 to vector<1x64x1xf32>
      %c0_13 = arith.constant 0 : index
      %c0_14 = arith.constant 0 : index
      %c0_15 = arith.constant 0 : index
      %18 = vector.load %arg4[%c0_13, %c0_14, %c0_15] : memref<1x64x1xf32, #tpu.memory_space<vmem>>, vector<1x64x1xf32>
      tpu.vector_store %arg4[%c0_13, %c0_14, %c0_15], %17 {strides = array<i32>} : memref<1x64x1xf32, #tpu.memory_space<vmem>>, vector<1x64x1xf32>,
    } else {
    }
    %c0_6 = arith.constant 0 : index
    %c0_7 = arith.constant 0 : index
    %c0_8 = arith.constant 0 : index
    %9 = vector.load %arg4[%c0_6, %c0_7, %c0_8] : memref<1x64x1xf32, #tpu.memory_space<vmem>>, vector<1x64x1xf32>
    %10 = vector.shape_cast %9 : vector<1x64x1xf32> to vector<64x1xf32>
    %cst = arith.constant dense<0.000000e+00> : vector<64xf32>
    %11 = vector.multi_reduction <add>, %1, %cst [1] : vector<64x128xf32> to vector<64xf32>
    %12 = vector.shape_cast %11 : vector<64xf32> to vector<64x1xf32>
    %13 = arith.addf %10, %12 : vector<64x1xf32>
    %c0_9 = arith.constant 0 : index
    %c0_10 = arith.constant 0 : index
    %c0_11 = arith.constant 0 : index
    %14 = vector.load %arg4[%c0_9, %c0_10, %c0_11] : memref<1x64x1xf32, #tpu.memory_space<vmem>>, vector<1x64x1xf32>
    %15 = vector.shape_cast %14 : vector<1x64x1xf32> to vector<64x1xf32>
    %16 = vector.shape_cast %13 : vector<64x1xf32> to vector<1x64x1xf32>
    tpu.vector_store %arg4[%c0_9, %c0_10, %c0_11], %16 {strides = array<i32>} : memref<1x64x1xf32, #tpu.memory_space<vmem>>, vector<1x64x1xf32>,
    return
  }
  func.func @transform_0(%arg0: i32, %arg1: i32) -> (i32, i32, i32) {
    %c0_i32 = arith.constant 0 : i32
    %c0_i32_0 = arith.constant 0 : i32
    return %arg0, %c0_i32, %arg1 : i32, i32, i32
  }
  func.func @transform_1(%arg0: i32, %arg1: i32) -> (i32, i32, i32) {
    %c0_i32 = arith.constant 0 : i32
    %c0_i32_0 = arith.constant 0 : i32
    return %arg0, %c0_i32, %arg1 : i32, i32, i32
  }
  func.func @transform_2(%arg0: i32, %arg1: i32) -> (i32, i32, i32) {
    %c0_i32 = arith.constant 0 : i32
    %c0_i32_0 = arith.constant 0 : i32
    %c0_i32_1 = arith.constant 0 : i32
    return %arg0, %c0_i32, %c0_i32_0 : i32, i32, i32
  }
}

</mosaic_0001>

<bundles_post_ra>
// kernel: tpu_custom_call.1
= control target key start
LH: loop header
LB: loop body
LE: loop exit
PB: predicated region body
PF: predicated region fallthrough
CT: control target
= control target key end

     0   :  { %8 = vsyncpa [#allocation3], 0  ;;  %s937_s0 = inlined_call_operand.hbm [shape: f32[2,64,256], index: 0, kind: input, shape index: {}]   ;;  %s938_s1 = inlined_call_operand.hbm [shape: bf16[2,64,256], index: 1, kind: output, shape index: {0}]   ;;  %s939_s2 = inlined_call_operand.vmem [shape: f32[2,64,1], index: 2, kind: output, shape index: {1}]  }
   0x1   :  { %10 = vsyncpa [#allocation3 + $0x1], 0 }
   0x2   :  { %11 = vsyncpa [#allocation4], 0 }
   0x3   :  { %13 = vsyncpa [#allocation4 + $0x1], 0  ;;  %s723_s9 = smov 0   ;;  %s725_s10 = smov 0  }
   0x4   :  { %s727_s11 = smov 0   ;;  %s729_s12 = smov 0  }
   0x5   :  { %s731_s13 = smov 0   ;;  %s733_s14 = smov 0  }
   0x6   :  { %s735_s15 = smov 0   ;;  %s737_s16 = smov 0  }
   0x7 LB: > { %s430_s17 = sadd.s32 4294967295, %s697_s16   ;;  %s431_s18 = sadd.s32 4294967294, %s697_s16   ;;  %s697_s16 = sphi %s737_s16, %s19_s16   ;;  %s693_s15 = sphi %s735_s15, %s954_s15   ;;  %s689_s14 = sphi %s733_s14, %s953_s14   ;;  %s685_s13 = sphi %s731_s13, %s952_s13   ;;  %s681_s12 = sphi %s729_s12, %s951_s12   ;;  %s677_s11 = sphi %s727_s11, %s950_s11   ;;  %s673_s10 = sphi %s725_s10, %s949_s10   ;;  %s669_s9 = sphi %s723_s9, %s948_s9  }
   0x8   : > { %s28_s19 = sadd.s32 1, %s689_s14  ;;  %s31_s20 = sadd.s32 1, %s693_s15 }
   0x9   : > { %p29_p0 = scmp.ge.s32.totalorder %s28_s19, 2  ;;  %s40_s21 = sadd.s32 1, %s677_s11 }
   0xa   : > { %p47_p1 = scmp.ne.s32.totalorder %s677_s11, %s673_s10  ;;  %p48_p2 = scmp.eq.s32.totalorder %s697_s16, 0 }
   0xb   : > { %s956_s19 = smov (%p29_p0, %s28_s19), 0  ;;  %s958_s20 = smov (!%p29_p0, %s31_s20), %s693_s15 }
   0xc   : > { %s36_s22 = ssub.s32 %s689_s14, %s956_s19  ;;  %p776_p3 = por %p48_p2, %p47_p1 }
   0xd   : > { %p33_p4 = scmp.ge.s32.totalorder %s958_s20, 2  ;;  %p53_p5 = scmp.ne.s32.totalorder %s673_s10, %s669_s9 }
   0xe   : > { %p54_p6 = scmp.eq.s32.totalorder %s430_s17, 0  ;;  %p79_p7 = scmp.eq.s32.totalorder %s430_s17, 3 }
   0xf   : > { %s960_s20 = smov (%p33_p4, %s958_s20), 0  ;;  %p85_p10 = scmp.eq.s32.totalorder %s431_s18, 3 }
  0x10   : > { %942 = sst [smem:[#allocation8_spill]] %s960_s20  ;;  %p784_p8 = por %p54_p6, %p53_p5 }
  0x11   : > { %p788_p9 = por %p79_p7, %p47_p1  ;;  %s35_s26 = ssub.s32 %s693_s15, %s960_s20 }
  0x12   : > { %s37_s27 = sor.u32 %s36_s22, %s35_s26  ;;  %p794_p12 = por %p85_p10, %p53_p5 }
  0x13   : > { %p38_p11 = scmp.eq.s32.totalorder %s37_s27, 0  ;;  %p500_p13 = scmp.lt.s32.totalorder %s697_s16, 4 }
  0x14   : > { %s131_s29 = sand.u32 1, %s677_s11   ;;  %s435_s4 = sshll.u32 %s693_s15, 4 }
  0x15   : > { %s801_s30 = scalar_select %p38_p11, %s677_s11, %s40_s21  }
  0x16   : > { %s434_s3 = sshll.u32 %s131_s29, 6  ;;  %s140_s5 = sadd.s32 %s689_s14, %s435_s4 }
  0x17   : > { %s135_s6 = scalar_lea.vmem [#allocation2], %s434_s3  ;;  %s436_s8 = sshll.u32 %s140_s5, 7 }
  0x18   : > { %s143_s7 = sshll.u32 %s135_s6, 4  ;;  %s142_s18 = scalar_lea.hbm %s937_s0, %s436_s8  ;;  %s144_s7 = int_to_ptr.vmem [resolvable:$true] %s143_s7 }
  0x19   : > { %p810_p0 = pnand %p500_p13, %p776_p3  ;;  %s132_s26 = scalar_lea.sflag [#allocation3], %s131_s29 }
  0x1a   : > { %s586_s21 = scalar_lea.vmem %s144_s7, 1024  ;;  %s699_s27 = smov [#allocation2]  }
  0x1b   : > { %p575_p1 = pneg %p810_p0  ;;  %p587_p2 = scmp.ne.s32.totalorder %s144_s7, %s586_s21 }
  0x1c   : > { %s591_s3 = sshll.u32 %s699_s27, 4  ;;  %s592_s3 = int_to_ptr.vmem [resolvable:$false] %s591_s3 }
  0x1d   : > { %p589_p4 = pnand %p587_p2, %p575_p1  ;;  %s593_s4 = scalar_lea.vmem %s592_s3, 2048 }
  0x1e   : > { %p594_p6 = scmp.lt.s32.totalorder %s144_s7, %s592_s3  ;;  %p595_p7 = scmp.lt.s32.totalorder %s593_s4, %s586_s21 }
  0x1f   : > { %p590_p5 = pneg %p589_p4 }
  0x20   : > { %p596_p10 = por %p595_p7, %p594_p6 }
  0x22   : > { %p597_p11 = pnand %p596_p10, %p590_p5 }
  0x24   : > { %600 = shalt.err (!%p597_p11)
}
  0x25   : > { %s700_s20 = smov 256   ;;  %s701_s23 = smov 128  }
  0x26   : > { %s702_s29 = smov 8   ;;  %p437_p3 = scmp.ge.s32.totalorder %s697_s16, 1 }
  0x27   : > { %495 = dma.hbm_to_vmem [thread:$0]  (!%p810_p0), %s142_s18, 1024, %s144_s7, %s132_s26, %s700_s20, %s701_s23, %s702_s29  }
  0x28   : > { %p151_p13 = scmp.lt.s32.totalorder %s697_s16, 5 }
  0x2a   : > { %p152_p1 = pnand %p437_p3, %p151_p13 }
  0x2b   : > { %s821_s5 = sand.u32 (!%p152_p1), 1, %s673_s10  }
  0x2c   : > { %155 = sbr.rel (%p152_p1) target bundleno = 216 (0xd8), region = 24  ;;  %s438_s6 = sshll.u32 (!%p152_p1), %s821_s5, 6 }
  0x2d   : > { %s158_s8 = scalar_lea.sflag (!%p152_p1), [#allocation3], %s821_s5  ;;  %s161_s17 = scalar_lea.vmem (!%p152_p1), [#allocation2], %s438_s6 }
  0x31   : > { %660 = dma.done.wait (%p784_p8), %s158_s8, 1024  }
  0x32   : > { %662 = vsyncadd (%p784_p8), %s158_s8, 4294966272  ;;  %p187_p0 = scmp.lt.s32.totalorder %s685_s13, 1  ;;  %s439_s18 = sshll.u32 %s821_s5, 5  ;;  %v192_v0 = vld [vmem:[%s161_s17] sm:$0xff]  ;;  %v193_v1 = vld [vmem:[%s161_s17 + $0x8] sm:$0xff] }
  0x33   : > { %v194_v2 = vld [vmem:[%s161_s17 + $0x10] sm:$0xff]  ;;  %v468_v3 = vpack.c.bf16 %v193_v1, %v192_v0  ;;  %v195_v4 = vld [vmem:[%s161_s17 + $0x18] sm:$0xff]  ;;  %v196_v5 = vld [vmem:[%s161_s17 + $0x20] sm:$0xff]  ;;  %s837_s24 = scalar_lea.vmem [#allocation5], %s439_s18  ;;  %p450_p8 = scmp.ne.s32.totalorder %s681_s12, 0 }
  0x34   : > { %s188_s7 = scalar_select %p187_p0, %s685_s13, 1  ;;  %v197_v6 = vld [vmem:[%s161_s17 + $0x28] sm:$0xff]  ;;  %v473_v7 = vpack.c.bf16 %v195_v4, %v194_v2  ;;  %v198_v9 = vld [vmem:[%s161_s17 + $0x30] sm:$0xff]  ;;  %v199_v10 = vld [vmem:[%s161_s17 + $0x38] sm:$0xff] }
  0x35   : > { %v478_v8 = vpack.c.bf16 %v197_v6, %v196_v5  ;;  %469 = vst [vmem:[%s837_s24] sm:$0xff] %v468_v3   ;;  %v483_v11 = vpack.c.bf16 %v199_v10, %v198_v9  ;;  %243 = sbr.rel (%p450_p8) target bundleno = 63 (0x3f), region = 32 }
  0x36   : > { %s456_s22 = sshll.u32 %s188_s7, 6  ;;  %485 = vst [vmem:[%s837_s24 + $0x8] sm:$0xff] %v473_v7  }
  0x37   : > { %s835_s27 = scalar_lea.vmem %s939_s2, %s456_s22  ;;  %486 = vst [vmem:[%s837_s24 + $0x10] sm:$0xff] %v478_v8   ;;  %487 = vst [vmem:[%s837_s24 + $0x18] sm:$0xff] %v483_v11  }
  0x3a   : > { %vm244_vm0 = vcmask 7168   ;;  %v703_v12 = vmov 0.0  }
  0x3b   : > { %245 = vst.msk [vmem:[%s835_s27] sm:$0xff] %vm244_vm0, %v703_v12  ;;  %246 = vst.msk [vmem:[%s835_s27 + $0x8] sm:$0xff] %vm244_vm0, %v703_v12 }
  0x3c   : > { %247 = vst.msk [vmem:[%s835_s27 + $0x10] sm:$0xff] %vm244_vm0, %v703_v12  ;;  %248 = vst.msk [vmem:[%s835_s27 + $0x18] sm:$0xff] %vm244_vm0, %v703_v12 }
  0x3d   : > { %249 = vst.msk [vmem:[%s835_s27 + $0x20] sm:$0xff] %vm244_vm0, %v703_v12  ;;  %250 = vst.msk [vmem:[%s835_s27 + $0x28] sm:$0xff] %vm244_vm0, %v703_v12 }
  0x3e   : > { %251 = vst.msk [vmem:[%s835_s27 + $0x30] sm:$0xff] %vm244_vm0, %v703_v12  ;;  %252 = vst.msk [vmem:[%s835_s27 + $0x38] sm:$0xff] %vm244_vm0, %v703_v12 }
  0x3f PF: > { %265 = vadd.xlane.f32.xlu1 %v194_v2  ;;  %261 = vadd.xlane.f32.xlu0 %v192_v0  ;;  %s452_s3 = sshll.u32 %s685_s13, 4  ;;  %s314_s23 = sshll.u32 %s837_s24, 4  ;;  %s860_s23 = int_to_ptr.vmem [resolvable:$true] %s314_s23 }
  0x40   : > { %s311_s4 = sadd.s32 %s681_s12, %s452_s3  ;;  %s295_s17 = scalar_lea.sflag [#allocation4], %s821_s5 }
  0x41   : > { %s453_s20 = sshll.u32 %s311_s4, 6  ;;  %s601_s7 = scalar_lea.vmem %s860_s23, 512 }
  0x42   : > { %s858_s8 = scalar_lea.hbm %s938_s1, %s453_s20  ;;  %p602_p2 = scmp.ne.s32.totalorder %s860_s23, %s601_s7 }
  0x43   : > { %267 = vadd.xlane.f32.xlu1 %v195_v4  ;;  %263 = vadd.xlane.f32.xlu0 %v193_v1  ;;  %s704_s13 = smov [#allocation5]  }
  0x44   : > { %p603_p4 = pnand %p602_p2, %p788_p9  ;;  %s605_s12 = sshll.u32 %s704_s13, 4  ;;  %s606_s12 = int_to_ptr.vmem [resolvable:$false] %s605_s12 }
  0x45   : > { %s607_s18 = scalar_lea.vmem %s606_s12, 1024  ;;  %p608_p6 = scmp.lt.s32.totalorder %s860_s23, %s606_s12 }
  0x46   : > { %p604_p5 = pneg %p603_p4  ;;  %p609_p7 = scmp.lt.s32.totalorder %s607_s18, %s601_s7 }
  0x47   : > { %271 = vadd.xlane.f32.xlu1 %v197_v6  ;;  %269 = vadd.xlane.f32.xlu0 %v196_v5 }
  0x48   : > { %p610_p10 = por %p609_p7, %p608_p6 }
  0x4a   : > { %p611_p11 = pnand %p610_p10, %p604_p5 }
  0x4b   : > { %275 = vadd.xlane.f32.xlu1 %v199_v10  ;;  %273 = vadd.xlane.f32.xlu0 %v198_v9 }
  0x4c   : > { %614 = shalt.err (!%p611_p11)
}
  0x4d   : > { %s615_s22 = scalar_lea.hbm %s858_s8, 512  ;;  %s619_s24 = scalar_lea.hbm %s938_s1, 2048 }
  0x4e   : > { %p616_p3 = scmp.ne.s32.totalorder %s858_s8, %s615_s22  ;;  %p620_p0 = scmp.lt.s32.totalorder %s858_s8, %s938_s1 }
  0x4f   : > { %p621_p8 = scmp.lt.s32.totalorder %s619_s24, %s615_s22 }
  0x50   : > { %p617_p13 = pnand %p616_p3, %p788_p9 }
  0x51   : > { %p622_p2 = por %p621_p8, %p620_p0 }
  0x52   : > { %p618_p1 = pneg %p617_p13 }
  0x54   : > { %p623_p4 = pnand %p622_p2, %p618_p1 }
  0x56   : > { %626 = shalt.err (!%p623_p4)
}
  0x57   : > { %s705_s20 = smov 64   ;;  %s706_s29 = smov 128   ;;  %v255_v13 = vld [vmem:[%s835_s27 + $0x10] sm:$0xff]  ;;  %v253_v14 = vld [vmem:[%s835_s27] sm:$0xff]  ;;  %vm285_vm1 = vcmask 7168   ;;  %v256_v19 = vld [vmem:[%s835_s27 + $0x18] sm:$0xff] }
  0x58   : > { %s707_s6 = smov 4   ;;  %v254_v20 = vld [vmem:[%s835_s27 + $0x8] sm:$0xff]  ;;  %v257_v26 = vld [vmem:[%s835_s27 + $0x20] sm:$0xff]  ;;  %v260_v31 = vld [vmem:[%s835_s27 + $0x38] sm:$0xff] }
  0x59   : > { %490 = dma.vmem_to_hbm [thread:$0]  (%p788_p9), %s860_s23, 512, %s858_s8, %s295_s17, %s705_s20, %s706_s29, %s707_s6  }
  0x5a   : > { %v258_v25 = vld [vmem:[%s835_s27 + $0x28] sm:$0xff]  ;;  %v259_v32 = vld [vmem:[%s835_s27 + $0x30] sm:$0xff] }
  0xc8   : > { %v266_v15 = vpop.xlane.xlu1 %265  ;;  %v262_v16 = vpop.xlane.xlu0 %261 }
  0xc9   : > { %v279_v17 = vadd.f32 %v266_v15, %v255_v13  ;;  %v277_v18 = vadd.f32 %v262_v16, %v253_v14 }
  0xcb   : > { %288 = vst.msk [vmem:[%s835_s27 + $0x10] sm:$0xff] %vm285_vm1, %v279_v17  ;;  %286 = vst.msk [vmem:[%s835_s27] sm:$0xff] %vm285_vm1, %v277_v18 }
  0xcc   : > { %v268_v21 = vpop.xlane.xlu1 %267  ;;  %v264_v22 = vpop.xlane.xlu0 %263 }
  0xcd   : > { %v280_v23 = vadd.f32 %v268_v21, %v256_v19  ;;  %v278_v24 = vadd.f32 %v264_v22, %v254_v20 }
  0xcf   : > { %289 = vst.msk [vmem:[%s835_s27 + $0x18] sm:$0xff] %vm285_vm1, %v280_v23  ;;  %287 = vst.msk [vmem:[%s835_s27 + $0x8] sm:$0xff] %vm285_vm1, %v278_v24 }
  0xd0   : > { %v272_v27 = vpop.xlane.xlu1 %271  ;;  %v270_v28 = vpop.xlane.xlu0 %269 }
  0xd1   : > { %v282_v29 = vadd.f32 %v272_v27, %v258_v25  ;;  %v281_v30 = vadd.f32 %v270_v28, %v257_v26 }
  0xd3   : > { %291 = vst.msk [vmem:[%s835_s27 + $0x28] sm:$0xff] %vm285_vm1, %v282_v29  ;;  %290 = vst.msk [vmem:[%s835_s27 + $0x20] sm:$0xff] %vm285_vm1, %v281_v30 }
  0xd4   : > { %v276_v33 = vpop.xlane.xlu1 %275  ;;  %v274_v34 = vpop.xlane.xlu0 %273 }
  0xd5   : > { %v284_v35 = vadd.f32 %v276_v33, %v260_v31  ;;  %v283_v36 = vadd.f32 %v274_v34, %v259_v32 }
  0xd7   : > { %293 = vst.msk [vmem:[%s835_s27 + $0x38] sm:$0xff] %vm285_vm1, %v284_v35  ;;  %292 = vst.msk [vmem:[%s835_s27 + $0x30] sm:$0xff] %vm285_vm1, %v283_v36 }
  0xd8 PF: > { %p501_p9 = scmp.ge.s32.totalorder %s697_s16, 2  ;;  %s332_s25 = sand.u32 1, %s669_s9  }
  0xd9   : > { %s333_s5 = scalar_lea.sflag [#allocation4], %s332_s25 }
  0xda   : > { %p497_p5 = pnand %p501_p9, %p794_p12 }
  0xdc   : > { %p498_p6 = pneg %p497_p5 }
  0xde   : > { %664 = dma.done.wait (%p498_p6), %s333_s5, 512  }
  0xdf   : > { %666 = vsyncadd (%p498_p6), %s333_s5, 4294966784  ;;  %s19_s16 = sadd.s32 1, %s697_s16   ;;  %s947_s27 = sld [smem:[#allocation8_spill]] }
  0xe0   : > { %p16_p7 = scmp.ge.s32.totalorder %s19_s16, 6   ;;  %s948_s9 = smov %s673_s10 }
  0xe1   : > { %s949_s10 = smov %s677_s11  ;;  %s950_s11 = smov %s801_s30 }
  0xe2   : > { %s951_s12 = smov %s689_s14  ;;  %s952_s13 = smov %s693_s15 }
  0xe3   : > { %s953_s14 = smov %s956_s19  ;;  %18 = sbr.rel (!%p16_p7) target bundleno = 7 (0x7), region = 85 }
  0xe5   : > { %s954_s15 = smov %s947_s27 }
  0xe8   :  { %346 = vsyncpa [#allocation3], 1 }
  0xe9   :  { %348 = vsyncpa [#allocation3 + $0x1], 1 }
  0xea   :  { %349 = vsyncpa [#allocation4], 1 }
  0xeb   :  { %351 = vsyncpa [#allocation4 + $0x1], 1 }

</bundles_post_ra>
